<compile_context>
chip_gen: v5e
topology: v5e:2x2
jax: 0.10.0
libtpu: 0.0.40
codegen_flags: <defaults>
</compile_context>

<pallas_src>
import math

import jax
import jax.numpy as jnp
from jax import lax
from jax.experimental import pallas as pl
from jax.experimental.pallas import tpu as pltpu

# ---------------- config (small, consistent with the module) ----------------
B = 2          # batch
S = 8          # sequence length
H = 32         # hidden_size
NH = 4         # num_attention_heads
HD = H // NH   # attention_head_size
LN_EPS = 1e-12


def bert_attention_kernel(x_ref, mask_ref, wqkv_ref, bqkv_ref,
                          wo_ref, bo_ref, g_ref, beta_ref, out_ref):
    """Single invocation: all batches, fused QKV, per-head accumulate into Wo."""
    x = x_ref[...]                     # (B*S, H)  f32
    mask = mask_ref[...]               # (B, S)    additive mask
    wqkv = wqkv_ref[...]               # (H, 3H)
    wo = wo_ref[...]                   # (H, H)
    bo = bo_ref[...]                   # (1, H)
    gamma = g_ref[...]                 # (1, H)
    beta = beta_ref[...]               # (1, H)

    # Fused Q/K/V projection: one MXU push instead of three.
    qkv = jnp.dot(x, wqkv, preferred_element_type=jnp.float32) + bqkv_ref[...]

    scale = 1.0 / math.sqrt(HD)

    # Static (tiny) loops over batch / head; only the mask differs per batch.
    for b in range(B):
        xb = x[b * S:(b + 1) * S, :]            # (S, H)
        qkv_b = qkv[b * S:(b + 1) * S, :]       # (S, 3H)
        mask_b = mask[b:b + 1, :]               # (1, S)

        o_b = jnp.zeros((S, H), jnp.float32)    # accumulate heads through Wo
        for h in range(NH):
            qh = qkv_b[:, h * HD:(h + 1) * HD]                  # (S, HD)
            kh = qkv_b[:, H + h * HD:H + (h + 1) * HD]          # (S, HD)
            vh = qkv_b[:, 2 * H + h * HD:2 * H + (h + 1) * HD]  # (S, HD)

            # scores = q @ k^T without materializing a transpose (MXU consumes it)
            scores = lax.dot_general(
                qh, kh, (((1,), (1,)), ((), ())),
                preferred_element_type=jnp.float32) * scale
            scores = scores + mask_b                            # (S,S)+(1,S)

            # softmax (f32 throughout; EUP reciprocal for the denominator)
            m = jnp.max(scores, axis=-1, keepdims=True)
            e = jnp.exp(scores - m)
            denom = jnp.sum(e, axis=-1, keepdims=True)
            probs = e * pl.reciprocal(denom, approx=True)

            ctx_h = jnp.dot(probs, vh, preferred_element_type=jnp.float32)   # (S, HD)
            # accumulate directly into (S, H): replaces concat + single matmul
            o_b = o_b + jnp.dot(ctx_h, wo[h * HD:(h + 1) * HD, :],
                                preferred_element_type=jnp.float32)

        # BertSelfOutput: dense bias + residual + LayerNorm
        hsum = o_b + bo + xb
        mu = jnp.mean(hsum, axis=-1, keepdims=True)
        var = jnp.mean((hsum - mu) * (hsum - mu), axis=-1, keepdims=True)
        normed = (hsum - mu) * lax.rsqrt(var + LN_EPS)
        out_b = normed * gamma + beta

        out_ref[pl.ds(b * S, S), :] = out_b.astype(out_ref.dtype)


def bert_attention(x, attention_mask, params):
    (wq, bq, wk, bk, wv, bv, wo, bo, g, beta) = params

    # wrapper-side fusion: one [H, 3H] QKV weight / [1, 3H] bias
    wqkv = jnp.concatenate([wq, wk, wv], axis=1)
    bqkv = jnp.concatenate([bq, bk, bv], axis=1)

    x2d = x.reshape(B * S, H)                   # collapse batch into rows
    mask2d = attention_mask.reshape(B, S)       # (B,1,1,S) -> (B,S), no in-kernel reshape

    def full(shape):
        return pl.BlockSpec(shape, lambda i: (0, 0))

    out2d = pl.pallas_call(
        bert_attention_kernel,
        out_shape=jax.ShapeDtypeStruct((B * S, H), x.dtype),
        grid=(1,),
        in_specs=[
            full((B * S, H)),       # hidden_states (flattened)
            full((B, S)),           # additive attention mask
            full((H, 3 * H)),       # fused Wqkv
            full((1, 3 * H)),       # fused bqkv
            full((H, H)),           # Wo
            full((1, H)),           # bo
            full((1, H)),           # LN gamma
            full((1, H)),           # LN beta
        ],
        out_specs=full((B * S, H)),
        compiler_params=pltpu.CompilerParams(
            dimension_semantics=("arbitrary",)),
    )(x2d, mask2d, wqkv, bqkv, wo, bo, g, beta)

    return out2d.reshape(B, S, H)


def bert_attention_ref(x, attention_mask, params):
    """Pure-JAX reference mirroring the PyTorch forward (eval mode)."""
    (wq, bq, wk, bk, wv, bv, wo, bo, g, beta) = params
    q = x @ wq + bq[0]
    k = x @ wk + bk[0]
    v = x @ wv + bv[0]

    def split(t):  # (B,S,H) -> (B,NH,S,HD)
        return t.reshape(B, S, NH, HD).transpose(0, 2, 1, 3)

    qh, kh, vh = split(q), split(k), split(v)
    scores = jnp.einsum('bhsd,bhtd->bhst', qh, kh) / math.sqrt(HD)
    scores = scores + attention_mask                              # (B,1,1,S) broadcast
    probs = jax.nn.softmax(scores, axis=-1)
    ctx = jnp.einsum('bhst,bhtd->bhsd', probs, vh)
    ctx = ctx.transpose(0, 2, 1, 3).reshape(B, S, H)
    o = ctx @ wo + bo[0]
    hsum = o + x
    mu = jnp.mean(hsum, axis=-1, keepdims=True)
    var = jnp.mean((hsum - mu) ** 2, axis=-1, keepdims=True)
    return ((hsum - mu) / jnp.sqrt(var + LN_EPS)) * g[0] + beta[0]


def init_params(key):
    ks = jax.random.split(key, 8)
    scale = 0.02
    wq = scale * jax.random.normal(ks[0], (H, H), jnp.float32)
    wk = scale * jax.random.normal(ks[1], (H, H), jnp.float32)
    wv = scale * jax.random.normal(ks[2], (H, H), jnp.float32)
    wo = scale * jax.random.normal(ks[3], (H, H), jnp.float32)
    bq = scale * jax.random.normal(ks[4], (1, H), jnp.float32)
    bk = scale * jax.random.normal(ks[5], (1, H), jnp.float32)
    bv = scale * jax.random.normal(ks[6], (1, H), jnp.float32)
    bo = scale * jax.random.normal(ks[7], (1, H), jnp.float32)
    g = jnp.ones((1, H), jnp.float32)
    beta = jnp.zeros((1, H), jnp.float32)
    return (wq, bq, wk, bk, wv, bv, wo, bo, g, beta)


if __name__ == "__main__":
    key = jax.random.PRNGKey(0)
    kx, km, kp = jax.random.split(key, 3)

    x = jax.random.normal(kx, (B, S, H), jnp.float32)
    # additive attention mask: 0 for attended positions, -10000 for masked
    keep = (jax.random.uniform(km, (B, 1, 1, S)) > 0.2).astype(jnp.float32)
    attention_mask = (1.0 - keep) * -10000.0

    params = init_params(kp)

    out = bert_attention(x, attention_mask, params)
    out = jax.block_until_ready(out)

    ref = bert_attention_ref(x, attention_mask, params)
    # tolerance slightly relaxed vs 1e-4 to cover the approx EUP reciprocal in
    # the softmax denominator (estimated contribution here is < 1e-4).
    assert jnp.allclose(out, ref, atol=2e-4, rtol=2e-4), "mismatch vs reference"

    print("KERNEL_OK")
</pallas_src>

<mosaic_0001>
module attributes {stable_mosaic.version = 11 : i64} {
  func.func @bert_attention_kernel(%arg0: i32, %arg1: memref<16x32xf32, #tpu.memory_space<vmem>>, %arg2: memref<2x8xf32, #tpu.memory_space<vmem>>, %arg3: memref<32x96xf32, #tpu.memory_space<vmem>>, %arg4: memref<1x96xf32, #tpu.memory_space<vmem>>, %arg5: memref<32x32xf32, #tpu.memory_space<vmem>>, %arg6: memref<1x32xf32, #tpu.memory_space<vmem>>, %arg7: memref<1x32xf32, #tpu.memory_space<vmem>>, %arg8: memref<1x32xf32, #tpu.memory_space<vmem>>, %arg9: memref<16x32xf32, #tpu.memory_space<vmem>>) attributes {dimension_semantics = [#tpu.dimension_semantics<arbitrary>], iteration_bounds = array<i64: 1>, scalar_prefetch = 0 : i64, scratch_operands = 0 : i64, tpu.core_type = #tpu.core_type<tc>, window_params = [{pipeline_mode = #tpu.pipeline_mode<synchronous>, transform_indices = @transform_0, window_bounds = array<i64: 16, 32>}, {pipeline_mode = #tpu.pipeline_mode<synchronous>, transform_indices = @transform_1, window_bounds = array<i64: 2, 8>}, {pipeline_mode = #tpu.pipeline_mode<synchronous>, transform_indices = @transform_2, window_bounds = array<i64: 32, 96>}, {pipeline_mode = #tpu.pipeline_mode<synchronous>, transform_indices = @transform_3, window_bounds = array<i64: 1, 96>}, {pipeline_mode = #tpu.pipeline_mode<synchronous>, transform_indices = @transform_4, window_bounds = array<i64: 32, 32>}, {pipeline_mode = #tpu.pipeline_mode<synchronous>, transform_indices = @transform_5, window_bounds = array<i64: 1, 32>}, {pipeline_mode = #tpu.pipeline_mode<synchronous>, transform_indices = @transform_6, window_bounds = array<i64: 1, 32>}, {pipeline_mode = #tpu.pipeline_mode<synchronous>, transform_indices = @transform_7, window_bounds = array<i64: 1, 32>}, {pipeline_mode = #tpu.pipeline_mode<synchronous>, transform_indices = @transform_8, window_bounds = array<i64: 16, 32>}]} {
    %c0 = arith.constant 0 : index
    %c0_0 = arith.constant 0 : index
    %0 = vector.load %arg1[%c0, %c0_0] : memref<16x32xf32, #tpu.memory_space<vmem>>, vector<16x32xf32>
    %c0_1 = arith.constant 0 : index
    %c0_2 = arith.constant 0 : index
    %1 = vector.load %arg2[%c0_1, %c0_2] : memref<2x8xf32, #tpu.memory_space<vmem>>, vector<2x8xf32>
    %c0_3 = arith.constant 0 : index
    %c0_4 = arith.constant 0 : index
    %2 = vector.load %arg3[%c0_3, %c0_4] : memref<32x96xf32, #tpu.memory_space<vmem>>, vector<32x96xf32>
    %c0_5 = arith.constant 0 : index
    %c0_6 = arith.constant 0 : index
    %3 = vector.load %arg5[%c0_5, %c0_6] : memref<32x32xf32, #tpu.memory_space<vmem>>, vector<32x32xf32>
    %c0_7 = arith.constant 0 : index
    %c0_8 = arith.constant 0 : index
    %4 = vector.load %arg6[%c0_7, %c0_8] : memref<1x32xf32, #tpu.memory_space<vmem>>, vector<1x32xf32>
    %c0_9 = arith.constant 0 : index
    %c0_10 = arith.constant 0 : index
    %5 = vector.load %arg7[%c0_9, %c0_10] : memref<1x32xf32, #tpu.memory_space<vmem>>, vector<1x32xf32>
    %c0_11 = arith.constant 0 : index
    %c0_12 = arith.constant 0 : index
    %6 = vector.load %arg8[%c0_11, %c0_12] : memref<1x32xf32, #tpu.memory_space<vmem>>, vector<1x32xf32>
    %cst = arith.constant dense<0.000000e+00> : vector<16x96xf32>
    %7 = tpu.matmul %0, %2, %cst {dimension_numbers = #tpu.dot_dimension_numbers<[1], [0], [0], [1], [0, 0, 1, 1], [], []>} : vector<16x32xf32>, vector<32x96xf32>, vector<16x96xf32> -> vector<16x96xf32>
    %c0_13 = arith.constant 0 : index
    %c0_14 = arith.constant 0 : index
    %8 = vector.load %arg4[%c0_13, %c0_14] : memref<1x96xf32, #tpu.memory_space<vmem>>, vector<1x96xf32>
    %9 = vector.broadcast %8 : vector<1x96xf32> to vector<16x96xf32>
    %10 = arith.addf %7, %9 : vector<16x96xf32>
    %11 = vector.extract_strided_slice %0 {offsets = [0, 0], sizes = [8, 32], strides = [1, 1]} : vector<16x32xf32> to vector<8x32xf32>
    %12 = vector.extract_strided_slice %10 {offsets = [0, 0], sizes = [8, 96], strides = [1, 1]} : vector<16x96xf32> to vector<8x96xf32>
    %13 = vector.extract_strided_slice %1 {offsets = [0, 0], sizes = [1, 8], strides = [1, 1]} : vector<2x8xf32> to vector<1x8xf32>
    %cst_15 = arith.constant 0.000000e+00 : f32
    %14 = vector.broadcast %cst_15 : f32 to vector<8x32xf32>
    %15 = vector.extract_strided_slice %12 {offsets = [0, 0], sizes = [8, 8], strides = [1, 1]} : vector<8x96xf32> to vector<8x8xf32>
    %16 = vector.extract_strided_slice %12 {offsets = [0, 32], sizes = [8, 8], strides = [1, 1]} : vector<8x96xf32> to vector<8x8xf32>
    %17 = vector.extract_strided_slice %12 {offsets = [0, 64], sizes = [8, 8], strides = [1, 1]} : vector<8x96xf32> to vector<8x8xf32>
    %cst_16 = arith.constant dense<0.000000e+00> : vector<8x8xf32>
    %18 = tpu.matmul %15, %16, %cst_16 {dimension_numbers = #tpu.dot_dimension_numbers<[1], [1], [0], [0], [0, 0, 1, 0], [], []>} : vector<8x8xf32>, vector<8x8xf32>, vector<8x8xf32> -> vector<8x8xf32>
    %cst_17 = arith.constant 0.353553385 : f32
    %19 = vector.broadcast %cst_17 : f32 to vector<8x8xf32>
    %20 = arith.mulf %18, %19 : vector<8x8xf32>
    %21 = vector.broadcast %13 : vector<1x8xf32> to vector<8x8xf32>
    %22 = arith.addf %20, %21 : vector<8x8xf32>
    %cst_18 = arith.constant dense<0xFF800000> : vector<8xf32>
    %23 = vector.multi_reduction <maximumf>, %22, %cst_18 [1] : vector<8x8xf32> to vector<8xf32>
    %24 = vector.shape_cast %23 : vector<8xf32> to vector<8x1xf32>
    %25 = vector.broadcast %24 : vector<8x1xf32> to vector<8x8xf32>
    %26 = arith.subf %22, %25 : vector<8x8xf32>
    %27 = math.exp %26 : vector<8x8xf32>
    %cst_19 = arith.constant dense<0.000000e+00> : vector<8xf32>
    %28 = vector.multi_reduction <add>, %27, %cst_19 [1] : vector<8x8xf32> to vector<8xf32>
    %29 = vector.shape_cast %28 : vector<8xf32> to vector<8x1xf32>
    %30 = tpu.reciprocal %29 {approx = true} : vector<8x1xf32> -> vector<8x1xf32>
    %31 = vector.broadcast %30 : vector<8x1xf32> to vector<8x8xf32>
    %32 = arith.mulf %27, %31 : vector<8x8xf32>
    %cst_20 = arith.constant dense<0.000000e+00> : vector<8x8xf32>
    %33 = tpu.matmul %32, %17, %cst_20 {dimension_numbers = #tpu.dot_dimension_numbers<[1], [0], [0], [1], [0, 0, 1, 1], [], []>} : vector<8x8xf32>, vector<8x8xf32>, vector<8x8xf32> -> vector<8x8xf32>
    %34 = vector.extract_strided_slice %3 {offsets = [0, 0], sizes = [8, 32], strides = [1, 1]} : vector<32x32xf32> to vector<8x32xf32>
    %cst_21 = arith.constant dense<0.000000e+00> : vector<8x32xf32>
    %35 = tpu.matmul %33, %34, %cst_21 {dimension_numbers = #tpu.dot_dimension_numbers<[1], [0], [0], [1], [0, 0, 1, 1], [], []>} : vector<8x8xf32>, vector<8x32xf32>, vector<8x32xf32> -> vector<8x32xf32>
    %36 = arith.addf %14, %35 : vector<8x32xf32>
    %37 = vector.extract_strided_slice %12 {offsets = [0, 8], sizes = [8, 8], strides = [1, 1]} : vector<8x96xf32> to vector<8x8xf32>
    %38 = vector.extract_strided_slice %12 {offsets = [0, 40], sizes = [8, 8], strides = [1, 1]} : vector<8x96xf32> to vector<8x8xf32>
    %39 = vector.extract_strided_slice %12 {offsets = [0, 72], sizes = [8, 8], strides = [1, 1]} : vector<8x96xf32> to vector<8x8xf32>
    %cst_22 = arith.constant dense<0.000000e+00> : vector<8x8xf32>
    %40 = tpu.matmul %37, %38, %cst_22 {dimension_numbers = #tpu.dot_dimension_numbers<[1], [1], [0], [0], [0, 0, 1, 0], [], []>} : vector<8x8xf32>, vector<8x8xf32>, vector<8x8xf32> -> vector<8x8xf32>
    %cst_23 = arith.constant 0.353553385 : f32
    %41 = vector.broadcast %cst_23 : f32 to vector<8x8xf32>
    %42 = arith.mulf %40, %41 : vector<8x8xf32>
    %43 = vector.broadcast %13 : vector<1x8xf32> to vector<8x8xf32>
    %44 = arith.addf %42, %43 : vector<8x8xf32>
    %cst_24 = arith.constant dense<0xFF800000> : vector<8xf32>
    %45 = vector.multi_reduction <maximumf>, %44, %cst_24 [1] : vector<8x8xf32> to vector<8xf32>
    %46 = vector.shape_cast %45 : vector<8xf32> to vector<8x1xf32>
    %47 = vector.broadcast %46 : vector<8x1xf32> to vector<8x8xf32>
    %48 = arith.subf %44, %47 : vector<8x8xf32>
    %49 = math.exp %48 : vector<8x8xf32>
    %cst_25 = arith.constant dense<0.000000e+00> : vector<8xf32>
    %50 = vector.multi_reduction <add>, %49, %cst_25 [1] : vector<8x8xf32> to vector<8xf32>
    %51 = vector.shape_cast %50 : vector<8xf32> to vector<8x1xf32>
    %52 = tpu.reciprocal %51 {approx = true} : vector<8x1xf32> -> vector<8x1xf32>
    %53 = vector.broadcast %52 : vector<8x1xf32> to vector<8x8xf32>
    %54 = arith.mulf %49, %53 : vector<8x8xf32>
    %cst_26 = arith.constant dense<0.000000e+00> : vector<8x8xf32>
    %55 = tpu.matmul %54, %39, %cst_26 {dimension_numbers = #tpu.dot_dimension_numbers<[1], [0], [0], [1], [0, 0, 1, 1], [], []>} : vector<8x8xf32>, vector<8x8xf32>, vector<8x8xf32> -> vector<8x8xf32>
    %56 = vector.extract_strided_slice %3 {offsets = [8, 0], sizes = [8, 32], strides = [1, 1]} : vector<32x32xf32> to vector<8x32xf32>
    %cst_27 = arith.constant dense<0.000000e+00> : vector<8x32xf32>
    %57 = tpu.matmul %55, %56, %cst_27 {dimension_numbers = #tpu.dot_dimension_numbers<[1], [0], [0], [1], [0, 0, 1, 1], [], []>} : vector<8x8xf32>, vector<8x32xf32>, vector<8x32xf32> -> vector<8x32xf32>
    %58 = arith.addf %36, %57 : vector<8x32xf32>
    %59 = vector.extract_strided_slice %12 {offsets = [0, 16], sizes = [8, 8], strides = [1, 1]} : vector<8x96xf32> to vector<8x8xf32>
    %60 = vector.extract_strided_slice %12 {offsets = [0, 48], sizes = [8, 8], strides = [1, 1]} : vector<8x96xf32> to vector<8x8xf32>
    %61 = vector.extract_strided_slice %12 {offsets = [0, 80], sizes = [8, 8], strides = [1, 1]} : vector<8x96xf32> to vector<8x8xf32>
    %cst_28 = arith.constant dense<0.000000e+00> : vector<8x8xf32>
    %62 = tpu.matmul %59, %60, %cst_28 {dimension_numbers = #tpu.dot_dimension_numbers<[1], [1], [0], [0], [0, 0, 1, 0], [], []>} : vector<8x8xf32>, vector<8x8xf32>, vector<8x8xf32> -> vector<8x8xf32>
    %cst_29 = arith.constant 0.353553385 : f32
    %63 = vector.broadcast %cst_29 : f32 to vector<8x8xf32>
    %64 = arith.mulf %62, %63 : vector<8x8xf32>
    %65 = vector.broadcast %13 : vector<1x8xf32> to vector<8x8xf32>
    %66 = arith.addf %64, %65 : vector<8x8xf32>
    %cst_30 = arith.constant dense<0xFF800000> : vector<8xf32>
    %67 = vector.multi_reduction <maximumf>, %66, %cst_30 [1] : vector<8x8xf32> to vector<8xf32>
    %68 = vector.shape_cast %67 : vector<8xf32> to vector<8x1xf32>
    %69 = vector.broadcast %68 : vector<8x1xf32> to vector<8x8xf32>
    %70 = arith.subf %66, %69 : vector<8x8xf32>
    %71 = math.exp %70 : vector<8x8xf32>
    %cst_31 = arith.constant dense<0.000000e+00> : vector<8xf32>
    %72 = vector.multi_reduction <add>, %71, %cst_31 [1] : vector<8x8xf32> to vector<8xf32>
    %73 = vector.shape_cast %72 : vector<8xf32> to vector<8x1xf32>
    %74 = tpu.reciprocal %73 {approx = true} : vector<8x1xf32> -> vector<8x1xf32>
    %75 = vector.broadcast %74 : vector<8x1xf32> to vector<8x8xf32>
    %76 = arith.mulf %71, %75 : vector<8x8xf32>
    %cst_32 = arith.constant dense<0.000000e+00> : vector<8x8xf32>
    %77 = tpu.matmul %76, %61, %cst_32 {dimension_numbers = #tpu.dot_dimension_numbers<[1], [0], [0], [1], [0, 0, 1, 1], [], []>} : vector<8x8xf32>, vector<8x8xf32>, vector<8x8xf32> -> vector<8x8xf32>
    %78 = vector.extract_strided_slice %3 {offsets = [16, 0], sizes = [8, 32], strides = [1, 1]} : vector<32x32xf32> to vector<8x32xf32>
    %cst_33 = arith.constant dense<0.000000e+00> : vector<8x32xf32>
    %79 = tpu.matmul %77, %78, %cst_33 {dimension_numbers = #tpu.dot_dimension_numbers<[1], [0], [0], [1], [0, 0, 1, 1], [], []>} : vector<8x8xf32>, vector<8x32xf32>, vector<8x32xf32> -> vector<8x32xf32>
    %80 = arith.addf %58, %79 : vector<8x32xf32>
    %81 = vector.extract_strided_slice %12 {offsets = [0, 24], sizes = [8, 8], strides = [1, 1]} : vector<8x96xf32> to vector<8x8xf32>
    %82 = vector.extract_strided_slice %12 {offsets = [0, 56], sizes = [8, 8], strides = [1, 1]} : vector<8x96xf32> to vector<8x8xf32>
    %83 = vector.extract_strided_slice %12 {offsets = [0, 88], sizes = [8, 8], strides = [1, 1]} : vector<8x96xf32> to vector<8x8xf32>
    %cst_34 = arith.constant dense<0.000000e+00> : vector<8x8xf32>
    %84 = tpu.matmul %81, %82, %cst_34 {dimension_numbers = #tpu.dot_dimension_numbers<[1], [1], [0], [0], [0, 0, 1, 0], [], []>} : vector<8x8xf32>, vector<8x8xf32>, vector<8x8xf32> -> vector<8x8xf32>
    %cst_35 = arith.constant 0.353553385 : f32
    %85 = vector.broadcast %cst_35 : f32 to vector<8x8xf32>
    %86 = arith.mulf %84, %85 : vector<8x8xf32>
    %87 = vector.broadcast %13 : vector<1x8xf32> to vector<8x8xf32>
    %88 = arith.addf %86, %87 : vector<8x8xf32>
    %cst_36 = arith.constant dense<0xFF800000> : vector<8xf32>
    %89 = vector.multi_reduction <maximumf>, %88, %cst_36 [1] : vector<8x8xf32> to vector<8xf32>
    %90 = vector.shape_cast %89 : vector<8xf32> to vector<8x1xf32>
    %91 = vector.broadcast %90 : vector<8x1xf32> to vector<8x8xf32>
    %92 = arith.subf %88, %91 : vector<8x8xf32>
    %93 = math.exp %92 : vector<8x8xf32>
    %cst_37 = arith.constant dense<0.000000e+00> : vector<8xf32>
    %94 = vector.multi_reduction <add>, %93, %cst_37 [1] : vector<8x8xf32> to vector<8xf32>
    %95 = vector.shape_cast %94 : vector<8xf32> to vector<8x1xf32>
    %96 = tpu.reciprocal %95 {approx = true} : vector<8x1xf32> -> vector<8x1xf32>
    %97 = vector.broadcast %96 : vector<8x1xf32> to vector<8x8xf32>
    %98 = arith.mulf %93, %97 : vector<8x8xf32>
    %cst_38 = arith.constant dense<0.000000e+00> : vector<8x8xf32>
    %99 = tpu.matmul %98, %83, %cst_38 {dimension_numbers = #tpu.dot_dimension_numbers<[1], [0], [0], [1], [0, 0, 1, 1], [], []>} : vector<8x8xf32>, vector<8x8xf32>, vector<8x8xf32> -> vector<8x8xf32>
    %100 = vector.extract_strided_slice %3 {offsets = [24, 0], sizes = [8, 32], strides = [1, 1]} : vector<32x32xf32> to vector<8x32xf32>
    %cst_39 = arith.constant dense<0.000000e+00> : vector<8x32xf32>
    %101 = tpu.matmul %99, %100, %cst_39 {dimension_numbers = #tpu.dot_dimension_numbers<[1], [0], [0], [1], [0, 0, 1, 1], [], []>} : vector<8x8xf32>, vector<8x32xf32>, vector<8x32xf32> -> vector<8x32xf32>
    %102 = arith.addf %80, %101 : vector<8x32xf32>
    %103 = vector.broadcast %4 : vector<1x32xf32> to vector<8x32xf32>
    %104 = arith.addf %102, %103 : vector<8x32xf32>
    %105 = arith.addf %104, %11 : vector<8x32xf32>
    %cst_40 = arith.constant dense<0.000000e+00> : vector<8xf32>
    %106 = vector.multi_reduction <add>, %105, %cst_40 [1] : vector<8x32xf32> to vector<8xf32>
    %107 = vector.shape_cast %106 : vector<8xf32> to vector<8x1xf32>
    %cst_41 = arith.constant 3.200000e+01 : f32
    %108 = vector.broadcast %cst_41 : f32 to vector<8x1xf32>
    %109 = arith.divf %107, %108 : vector<8x1xf32>
    %110 = vector.broadcast %109 : vector<8x1xf32> to vector<8x32xf32>
    %111 = arith.subf %105, %110 : vector<8x32xf32>
    %112 = vector.broadcast %109 : vector<8x1xf32> to vector<8x32xf32>
    %113 = arith.subf %105, %112 : vector<8x32xf32>
    %114 = arith.mulf %111, %113 : vector<8x32xf32>
    %cst_42 = arith.constant dense<0.000000e+00> : vector<8xf32>
    %115 = vector.multi_reduction <add>, %114, %cst_42 [1] : vector<8x32xf32> to vector<8xf32>
    %116 = vector.shape_cast %115 : vector<8xf32> to vector<8x1xf32>
    %cst_43 = arith.constant 3.200000e+01 : f32
    %117 = vector.broadcast %cst_43 : f32 to vector<8x1xf32>
    %118 = arith.divf %116, %117 : vector<8x1xf32>
    %119 = vector.broadcast %109 : vector<8x1xf32> to vector<8x32xf32>
    %120 = arith.subf %105, %119 : vector<8x32xf32>
    %cst_44 = arith.constant 9.99999996E-13 : f32
    %121 = vector.broadcast %cst_44 : f32 to vector<8x1xf32>
    %122 = arith.addf %118, %121 : vector<8x1xf32>
    %123 = math.rsqrt %122 : vector<8x1xf32>
    %124 = vector.broadcast %123 : vector<8x1xf32> to vector<8x32xf32>
    %125 = arith.mulf %120, %124 : vector<8x32xf32>
    %126 = vector.broadcast %5 : vector<1x32xf32> to vector<8x32xf32>
    %127 = arith.mulf %125, %126 : vector<8x32xf32>
    %128 = vector.broadcast %6 : vector<1x32xf32> to vector<8x32xf32>
    %129 = arith.addf %127, %128 : vector<8x32xf32>
    %c0_45 = arith.constant 0 : index
    %c0_46 = arith.constant 0 : index
    %130 = vector.load %arg9[%c0_45, %c0_46] : memref<16x32xf32, #tpu.memory_space<vmem>>, vector<8x32xf32>
    tpu.vector_store %arg9[%c0_45, %c0_46], %129 {strides = array<i32>} : memref<16x32xf32, #tpu.memory_space<vmem>>, vector<8x32xf32>,
    %131 = vector.extract_strided_slice %0 {offsets = [8, 0], sizes = [8, 32], strides = [1, 1]} : vector<16x32xf32> to vector<8x32xf32>
    %132 = vector.extract_strided_slice %10 {offsets = [8, 0], sizes = [8, 96], strides = [1, 1]} : vector<16x96xf32> to vector<8x96xf32>
    %133 = vector.extract_strided_slice %1 {offsets = [1, 0], sizes = [1, 8], strides = [1, 1]} : vector<2x8xf32> to vector<1x8xf32>
    %cst_47 = arith.constant 0.000000e+00 : f32
    %134 = vector.broadcast %cst_47 : f32 to vector<8x32xf32>
    %135 = vector.extract_strided_slice %132 {offsets = [0, 0], sizes = [8, 8], strides = [1, 1]} : vector<8x96xf32> to vector<8x8xf32>
    %136 = vector.extract_strided_slice %132 {offsets = [0, 32], sizes = [8, 8], strides = [1, 1]} : vector<8x96xf32> to vector<8x8xf32>
    %137 = vector.extract_strided_slice %132 {offsets = [0, 64], sizes = [8, 8], strides = [1, 1]} : vector<8x96xf32> to vector<8x8xf32>
    %cst_48 = arith.constant dense<0.000000e+00> : vector<8x8xf32>
    %138 = tpu.matmul %135, %136, %cst_48 {dimension_numbers = #tpu.dot_dimension_numbers<[1], [1], [0], [0], [0, 0, 1, 0], [], []>} : vector<8x8xf32>, vector<8x8xf32>, vector<8x8xf32> -> vector<8x8xf32>
    %cst_49 = arith.constant 0.353553385 : f32
    %139 = vector.broadcast %cst_49 : f32 to vector<8x8xf32>
    %140 = arith.mulf %138, %139 : vector<8x8xf32>
    %141 = vector.broadcast %133 : vector<1x8xf32> to vector<8x8xf32>
    %142 = arith.addf %140, %141 : vector<8x8xf32>
    %cst_50 = arith.constant dense<0xFF800000> : vector<8xf32>
    %143 = vector.multi_reduction <maximumf>, %142, %cst_50 [1] : vector<8x8xf32> to vector<8xf32>
    %144 = vector.shape_cast %143 : vector<8xf32> to vector<8x1xf32>
    %145 = vector.broadcast %144 : vector<8x1xf32> to vector<8x8xf32>
    %146 = arith.subf %142, %145 : vector<8x8xf32>
    %147 = math.exp %146 : vector<8x8xf32>
    %cst_51 = arith.constant dense<0.000000e+00> : vector<8xf32>
    %148 = vector.multi_reduction <add>, %147, %cst_51 [1] : vector<8x8xf32> to vector<8xf32>
    %149 = vector.shape_cast %148 : vector<8xf32> to vector<8x1xf32>
    %150 = tpu.reciprocal %149 {approx = true} : vector<8x1xf32> -> vector<8x1xf32>
    %151 = vector.broadcast %150 : vector<8x1xf32> to vector<8x8xf32>
    %152 = arith.mulf %147, %151 : vector<8x8xf32>
    %cst_52 = arith.constant dense<0.000000e+00> : vector<8x8xf32>
    %153 = tpu.matmul %152, %137, %cst_52 {dimension_numbers = #tpu.dot_dimension_numbers<[1], [0], [0], [1], [0, 0, 1, 1], [], []>} : vector<8x8xf32>, vector<8x8xf32>, vector<8x8xf32> -> vector<8x8xf32>
    %154 = vector.extract_strided_slice %3 {offsets = [0, 0], sizes = [8, 32], strides = [1, 1]} : vector<32x32xf32> to vector<8x32xf32>
    %cst_53 = arith.constant dense<0.000000e+00> : vector<8x32xf32>
    %155 = tpu.matmul %153, %154, %cst_53 {dimension_numbers = #tpu.dot_dimension_numbers<[1], [0], [0], [1], [0, 0, 1, 1], [], []>} : vector<8x8xf32>, vector<8x32xf32>, vector<8x32xf32> -> vector<8x32xf32>
    %156 = arith.addf %134, %155 : vector<8x32xf32>
    %157 = vector.extract_strided_slice %132 {offsets = [0, 8], sizes = [8, 8], strides = [1, 1]} : vector<8x96xf32> to vector<8x8xf32>
    %158 = vector.extract_strided_slice %132 {offsets = [0, 40], sizes = [8, 8], strides = [1, 1]} : vector<8x96xf32> to vector<8x8xf32>
    %159 = vector.extract_strided_slice %132 {offsets = [0, 72], sizes = [8, 8], strides = [1, 1]} : vector<8x96xf32> to vector<8x8xf32>
    %cst_54 = arith.constant dense<0.000000e+00> : vector<8x8xf32>
    %160 = tpu.matmul %157, %158, %cst_54 {dimension_numbers = #tpu.dot_dimension_numbers<[1], [1], [0], [0], [0, 0, 1, 0], [], []>} : vector<8x8xf32>, vector<8x8xf32>, vector<8x8xf32> -> vector<8x8xf32>
    %cst_55 = arith.constant 0.353553385 : f32
    %161 = vector.broadcast %cst_55 : f32 to vector<8x8xf32>
    %162 = arith.mulf %160, %161 : vector<8x8xf32>
    %163 = vector.broadcast %133 : vector<1x8xf32> to vector<8x8xf32>
    %164 = arith.addf %162, %163 : vector<8x8xf32>
    %cst_56 = arith.constant dense<0xFF800000> : vector<8xf32>
    %165 = vector.multi_reduction <maximumf>, %164, %cst_56 [1] : vector<8x8xf32> to vector<8xf32>
    %166 = vector.shape_cast %165 : vector<8xf32> to vector<8x1xf32>
    %167 = vector.broadcast %166 : vector<8x1xf32> to vector<8x8xf32>
    %168 = arith.subf %164, %167 : vector<8x8xf32>
    %169 = math.exp %168 : vector<8x8xf32>
    %cst_57 = arith.constant dense<0.000000e+00> : vector<8xf32>
    %170 = vector.multi_reduction <add>, %169, %cst_57 [1] : vector<8x8xf32> to vector<8xf32>
    %171 = vector.shape_cast %170 : vector<8xf32> to vector<8x1xf32>
    %172 = tpu.reciprocal %171 {approx = true} : vector<8x1xf32> -> vector<8x1xf32>
    %173 = vector.broadcast %172 : vector<8x1xf32> to vector<8x8xf32>
    %174 = arith.mulf %169, %173 : vector<8x8xf32>
    %cst_58 = arith.constant dense<0.000000e+00> : vector<8x8xf32>
    %175 = tpu.matmul %174, %159, %cst_58 {dimension_numbers = #tpu.dot_dimension_numbers<[1], [0], [0], [1], [0, 0, 1, 1], [], []>} : vector<8x8xf32>, vector<8x8xf32>, vector<8x8xf32> -> vector<8x8xf32>
    %176 = vector.extract_strided_slice %3 {offsets = [8, 0], sizes = [8, 32], strides = [1, 1]} : vector<32x32xf32> to vector<8x32xf32>
    %cst_59 = arith.constant dense<0.000000e+00> : vector<8x32xf32>
    %177 = tpu.matmul %175, %176, %cst_59 {dimension_numbers = #tpu.dot_dimension_numbers<[1], [0], [0], [1], [0, 0, 1, 1], [], []>} : vector<8x8xf32>, vector<8x32xf32>, vector<8x32xf32> -> vector<8x32xf32>
    %178 = arith.addf %156, %177 : vector<8x32xf32>
    %179 = vector.extract_strided_slice %132 {offsets = [0, 16], sizes = [8, 8], strides = [1, 1]} : vector<8x96xf32> to vector<8x8xf32>
    %180 = vector.extract_strided_slice %132 {offsets = [0, 48], sizes = [8, 8], strides = [1, 1]} : vector<8x96xf32> to vector<8x8xf32>
    %181 = vector.extract_strided_slice %132 {offsets = [0, 80], sizes = [8, 8], strides = [1, 1]} : vector<8x96xf32> to vector<8x8xf32>
    %cst_60 = arith.constant dense<0.000000e+00> : vector<8x8xf32>
    %182 = tpu.matmul %179, %180, %cst_60 {dimension_numbers = #tpu.dot_dimension_numbers<[1], [1], [0], [0], [0, 0, 1, 0], [], []>} : vector<8x8xf32>, vector<8x8xf32>, vector<8x8xf32> -> vector<8x8xf32>
    %cst_61 = arith.constant 0.353553385 : f32
    %183 = vector.broadcast %cst_61 : f32 to vector<8x8xf32>
    %184 = arith.mulf %182, %183 : vector<8x8xf32>
    %185 = vector.broadcast %133 : vector<1x8xf32> to vector<8x8xf32>
    %186 = arith.addf %184, %185 : vector<8x8xf32>
    %cst_62 = arith.constant dense<0xFF800000> : vector<8xf32>
    %187 = vector.multi_reduction <maximumf>, %186, %cst_62 [1] : vector<8x8xf32> to vector<8xf32>
    %188 = vector.shape_cast %187 : vector<8xf32> to vector<8x1xf32>
    %189 = vector.broadcast %188 : vector<8x1xf32> to vector<8x8xf32>
    %190 = arith.subf %186, %189 : vector<8x8xf32>
    %191 = math.exp %190 : vector<8x8xf32>
    %cst_63 = arith.constant dense<0.000000e+00> : vector<8xf32>
    %192 = vector.multi_reduction <add>, %191, %cst_63 [1] : vector<8x8xf32> to vector<8xf32>
    %193 = vector.shape_cast %192 : vector<8xf32> to vector<8x1xf32>
    %194 = tpu.reciprocal %193 {approx = true} : vector<8x1xf32> -> vector<8x1xf32>
    %195 = vector.broadcast %194 : vector<8x1xf32> to vector<8x8xf32>
    %196 = arith.mulf %191, %195 : vector<8x8xf32>
    %cst_64 = arith.constant dense<0.000000e+00> : vector<8x8xf32>
    %197 = tpu.matmul %196, %181, %cst_64 {dimension_numbers = #tpu.dot_dimension_numbers<[1], [0], [0], [1], [0, 0, 1, 1], [], []>} : vector<8x8xf32>, vector<8x8xf32>, vector<8x8xf32> -> vector<8x8xf32>
    %198 = vector.extract_strided_slice %3 {offsets = [16, 0], sizes = [8, 32], strides = [1, 1]} : vector<32x32xf32> to vector<8x32xf32>
    %cst_65 = arith.constant dense<0.000000e+00> : vector<8x32xf32>
    %199 = tpu.matmul %197, %198, %cst_65 {dimension_numbers = #tpu.dot_dimension_numbers<[1], [0], [0], [1], [0, 0, 1, 1], [], []>} : vector<8x8xf32>, vector<8x32xf32>, vector<8x32xf32> -> vector<8x32xf32>
    %200 = arith.addf %178, %199 : vector<8x32xf32>
    %201 = vector.extract_strided_slice %132 {offsets = [0, 24], sizes = [8, 8], strides = [1, 1]} : vector<8x96xf32> to vector<8x8xf32>
    %202 = vector.extract_strided_slice %132 {offsets = [0, 56], sizes = [8, 8], strides = [1, 1]} : vector<8x96xf32> to vector<8x8xf32>
    %203 = vector.extract_strided_slice %132 {offsets = [0, 88], sizes = [8, 8], strides = [1, 1]} : vector<8x96xf32> to vector<8x8xf32>
    %cst_66 = arith.constant dense<0.000000e+00> : vector<8x8xf32>
    %204 = tpu.matmul %201, %202, %cst_66 {dimension_numbers = #tpu.dot_dimension_numbers<[1], [1], [0], [0], [0, 0, 1, 0], [], []>} : vector<8x8xf32>, vector<8x8xf32>, vector<8x8xf32> -> vector<8x8xf32>
    %cst_67 = arith.constant 0.353553385 : f32
    %205 = vector.broadcast %cst_67 : f32 to vector<8x8xf32>
    %206 = arith.mulf %204, %205 : vector<8x8xf32>
    %207 = vector.broadcast %133 : vector<1x8xf32> to vector<8x8xf32>
    %208 = arith.addf %206, %207 : vector<8x8xf32>
    %cst_68 = arith.constant dense<0xFF800000> : vector<8xf32>
    %209 = vector.multi_reduction <maximumf>, %208, %cst_68 [1] : vector<8x8xf32> to vector<8xf32>
    %210 = vector.shape_cast %209 : vector<8xf32> to vector<8x1xf32>
    %211 = vector.broadcast %210 : vector<8x1xf32> to vector<8x8xf32>
    %212 = arith.subf %208, %211 : vector<8x8xf32>
    %213 = math.exp %212 : vector<8x8xf32>
    %cst_69 = arith.constant dense<0.000000e+00> : vector<8xf32>
    %214 = vector.multi_reduction <add>, %213, %cst_69 [1] : vector<8x8xf32> to vector<8xf32>
    %215 = vector.shape_cast %214 : vector<8xf32> to vector<8x1xf32>
    %216 = tpu.reciprocal %215 {approx = true} : vector<8x1xf32> -> vector<8x1xf32>
    %217 = vector.broadcast %216 : vector<8x1xf32> to vector<8x8xf32>
    %218 = arith.mulf %213, %217 : vector<8x8xf32>
    %cst_70 = arith.constant dense<0.000000e+00> : vector<8x8xf32>
    %219 = tpu.matmul %218, %203, %cst_70 {dimension_numbers = #tpu.dot_dimension_numbers<[1], [0], [0], [1], [0, 0, 1, 1], [], []>} : vector<8x8xf32>, vector<8x8xf32>, vector<8x8xf32> -> vector<8x8xf32>
    %220 = vector.extract_strided_slice %3 {offsets = [24, 0], sizes = [8, 32], strides = [1, 1]} : vector<32x32xf32> to vector<8x32xf32>
    %cst_71 = arith.constant dense<0.000000e+00> : vector<8x32xf32>
    %221 = tpu.matmul %219, %220, %cst_71 {dimension_numbers = #tpu.dot_dimension_numbers<[1], [0], [0], [1], [0, 0, 1, 1], [], []>} : vector<8x8xf32>, vector<8x32xf32>, vector<8x32xf32> -> vector<8x32xf32>
    %222 = arith.addf %200, %221 : vector<8x32xf32>
    %223 = vector.broadcast %4 : vector<1x32xf32> to vector<8x32xf32>
    %224 = arith.addf %222, %223 : vector<8x32xf32>
    %225 = arith.addf %224, %131 : vector<8x32xf32>
    %cst_72 = arith.constant dense<0.000000e+00> : vector<8xf32>
    %226 = vector.multi_reduction <add>, %225, %cst_72 [1] : vector<8x32xf32> to vector<8xf32>
    %227 = vector.shape_cast %226 : vector<8xf32> to vector<8x1xf32>
    %cst_73 = arith.constant 3.200000e+01 : f32
    %228 = vector.broadcast %cst_73 : f32 to vector<8x1xf32>
    %229 = arith.divf %227, %228 : vector<8x1xf32>
    %230 = vector.broadcast %229 : vector<8x1xf32> to vector<8x32xf32>
    %231 = arith.subf %225, %230 : vector<8x32xf32>
    %232 = vector.broadcast %229 : vector<8x1xf32> to vector<8x32xf32>
    %233 = arith.subf %225, %232 : vector<8x32xf32>
    %234 = arith.mulf %231, %233 : vector<8x32xf32>
    %cst_74 = arith.constant dense<0.000000e+00> : vector<8xf32>
    %235 = vector.multi_reduction <add>, %234, %cst_74 [1] : vector<8x32xf32> to vector<8xf32>
    %236 = vector.shape_cast %235 : vector<8xf32> to vector<8x1xf32>
    %cst_75 = arith.constant 3.200000e+01 : f32
    %237 = vector.broadcast %cst_75 : f32 to vector<8x1xf32>
    %238 = arith.divf %236, %237 : vector<8x1xf32>
    %239 = vector.broadcast %229 : vector<8x1xf32> to vector<8x32xf32>
    %240 = arith.subf %225, %239 : vector<8x32xf32>
    %cst_76 = arith.constant 9.99999996E-13 : f32
    %241 = vector.broadcast %cst_76 : f32 to vector<8x1xf32>
    %242 = arith.addf %238, %241 : vector<8x1xf32>
    %243 = math.rsqrt %242 : vector<8x1xf32>
    %244 = vector.broadcast %243 : vector<8x1xf32> to vector<8x32xf32>
    %245 = arith.mulf %240, %244 : vector<8x32xf32>
    %246 = vector.broadcast %5 : vector<1x32xf32> to vector<8x32xf32>
    %247 = arith.mulf %245, %246 : vector<8x32xf32>
    %248 = vector.broadcast %6 : vector<1x32xf32> to vector<8x32xf32>
    %249 = arith.addf %247, %248 : vector<8x32xf32>
    %c8 = arith.constant 8 : index
    %c0_77 = arith.constant 0 : index
    %250 = vector.load %arg9[%c8, %c0_77] : memref<16x32xf32, #tpu.memory_space<vmem>>, vector<8x32xf32>
    tpu.vector_store %arg9[%c8, %c0_77], %249 {strides = array<i32>} : memref<16x32xf32, #tpu.memory_space<vmem>>, vector<8x32xf32>,
    return
  }
  func.func @transform_0(%arg0: i32) -> (i32, i32) {
    %c0_i32 = arith.constant 0 : i32
    %c0_i32_0 = arith.constant 0 : i32
    %c0_i32_1 = arith.constant 0 : i32
    return %c0_i32, %c0_i32_0 : i32, i32
  }
  func.func @transform_1(%arg0: i32) -> (i32, i32) {
    %c0_i32 = arith.constant 0 : i32
    %c0_i32_0 = arith.constant 0 : i32
    %c0_i32_1 = arith.constant 0 : i32
    return %c0_i32, %c0_i32_0 : i32, i32
  }
  func.func @transform_2(%arg0: i32) -> (i32, i32) {
    %c0_i32 = arith.constant 0 : i32
    %c0_i32_0 = arith.constant 0 : i32
    %c0_i32_1 = arith.constant 0 : i32
    return %c0_i32, %c0_i32_0 : i32, i32
  }
  func.func @transform_3(%arg0: i32) -> (i32, i32) {
    %c0_i32 = arith.constant 0 : i32
    %c0_i32_0 = arith.constant 0 : i32
    %c0_i32_1 = arith.constant 0 : i32
    return %c0_i32, %c0_i32_0 : i32, i32
  }
  func.func @transform_4(%arg0: i32) -> (i32, i32) {
    %c0_i32 = arith.constant 0 : i32
    %c0_i32_0 = arith.constant 0 : i32
    %c0_i32_1 = arith.constant 0 : i32
    return %c0_i32, %c0_i32_0 : i32, i32
  }
  func.func @transform_5(%arg0: i32) -> (i32, i32) {
    %c0_i32 = arith.constant 0 : i32
    %c0_i32_0 = arith.constant 0 : i32
    %c0_i32_1 = arith.constant 0 : i32
    return %c0_i32, %c0_i32_0 : i32, i32
  }
  func.func @transform_6(%arg0: i32) -> (i32, i32) {
    %c0_i32 = arith.constant 0 : i32
    %c0_i32_0 = arith.constant 0 : i32
    %c0_i32_1 = arith.constant 0 : i32
    return %c0_i32, %c0_i32_0 : i32, i32
  }
  func.func @transform_7(%arg0: i32) -> (i32, i32) {
    %c0_i32 = arith.constant 0 : i32
    %c0_i32_0 = arith.constant 0 : i32
    %c0_i32_1 = arith.constant 0 : i32
    return %c0_i32, %c0_i32_0 : i32, i32
  }
  func.func @transform_8(%arg0: i32) -> (i32, i32) {
    %c0_i32 = arith.constant 0 : i32
    %c0_i32_0 = arith.constant 0 : i32
    %c0_i32_1 = arith.constant 0 : i32
    return %c0_i32, %c0_i32_0 : i32, i32
  }
}

</mosaic_0001>

<bundles_post_ra>
// kernel: tpu_custom_call.1
= control target key start
LH: loop header
LB: loop body
LE: loop exit
PB: predicated region body
PF: predicated region fallthrough
CT: control target
= control target key end

     0   :  { %13 = vsyncpa [#allocation3], 0  ;;  %s1432_s0 = inlined_call_operand.hbm [shape: f32[16,32], index: 0, kind: input, shape index: {}]   ;;  %s1433_s1 = inlined_call_operand.hbm [shape: f32[2,8], index: 1, kind: input, shape index: {}]   ;;  %s1434_s2 = inlined_call_operand.hbm [shape: f32[32,96], index: 2, kind: input, shape index: {}]   ;;  %s1435_s3 = inlined_call_operand.vmem [shape: f32[1,96], index: 3, kind: input, shape index: {}]   ;;  %s1436_s4 = inlined_call_operand.hbm [shape: f32[32,32], index: 4, kind: input, shape index: {}]   ;;  %s1437_s5 = inlined_call_operand.vmem [shape: f32[1,32], index: 5, kind: input, shape index: {}]   ;;  %s1438_s6 = inlined_call_operand.vmem [shape: f32[1,32], index: 6, kind: input, shape index: {}]   ;;  %s1439_s7 = inlined_call_operand.vmem [shape: f32[1,32], index: 7, kind: input, shape index: {}]   ;;  %s1440_s8 = inlined_call_operand.hbm [shape: f32[16,32], index: 8, kind: output, shape index: {}]  }
   0x1   :  { %14 = vsyncpa [#allocation6], 0 }
   0x2   :  { %15 = vsyncpa [#allocation9], 0  ;;  %s35_s29 = sshll.u32 %s1433_s1, 4  ;;  %s36_s29 = int_to_ptr.hbm [resolvable:$true] %s35_s29 }
   0x3   :  { %16 = vsyncpa [#allocation4], 0  ;;  %s1178_s30 = smov [#allocation5]   ;;  %s21_s12 = sshll.u32 %s1432_s0, 4  ;;  %s22_s12 = int_to_ptr.hbm [resolvable:$true] %s21_s12 }
   0x4   :  { %s37_s9 = sshll.u32 %s1178_s30, 4  ;;  %s1179_s13 = smov [#allocation2]   ;;  %s38_s9 = int_to_ptr.vmem [resolvable:$true] %s37_s9 }
   0x5   :  { %40 = dma.hbm_to_vmem [thread:$0]  %s36_s29, 32, %s38_s9, [#allocation6]  }
   0x6   :  { %s23_s14 = sshll.u32 %s1179_s13, 4  ;;  %s1180_s15 = smov 128   ;;  %s24_s14 = int_to_ptr.vmem [resolvable:$true] %s23_s14 }
   0x7   :  { %s1181_s16 = smov 8   ;;  %s45_s18 = sshll.u32 %s1434_s2, 4  ;;  %s46_s18 = int_to_ptr.hbm [resolvable:$true] %s45_s18 }
   0x8   :  { %29 = dma.hbm_to_vmem [thread:$0]  %s22_s12, 256, %s24_s14, [#allocation3], %s1180_s15, %s1180_s15, %s1181_s16  }
   0x9   :  { %s1182_s19 = smov [#allocation7]   ;;  %s60_s22 = sshll.u32 %s1436_s4, 4  ;;  %s61_s22 = int_to_ptr.hbm [resolvable:$true] %s60_s22 }
   0xa   :  { %s47_s20 = sshll.u32 %s1182_s19, 4  ;;  %s1183_s23 = smov [#allocation8]   ;;  %s48_s20 = int_to_ptr.vmem [resolvable:$true] %s47_s20 }
   0xb   :  { %53 = dma.hbm_to_vmem [thread:$0]  %s46_s18, 512, %s48_s20, [#allocation6], %s1180_s15, %s1180_s15, %s1181_s16  }
   0xc   :  { %s62_s24 = sshll.u32 %s1183_s23, 4  ;;  %s63_s24 = int_to_ptr.vmem [resolvable:$true] %s62_s24 }
   0xd   :  { %68 = dma.hbm_to_vmem [thread:$0]  %s61_s22, 512, %s63_s24, [#allocation9], %s1180_s15, %s1180_s15, %s1181_s16  }
   0xe   :  { %1170 = dma.done.wait [#allocation3], 256  }
   0xf   :  { %1171 = vsyncadd [#allocation3], 4294967040 }
  0x10   :  { %1172 = dma.done.wait [#allocation6], 544  }
  0x11   :  { %1173 = vsyncadd [#allocation6], 4294966752 }
  0x12   :  { %1174 = dma.done.wait [#allocation9], 512  }
  0x13   :  { %1175 = vsyncadd [#allocation9], 4294966784  ;;  %v97_v0 = vld [vmem:[#allocation7 + $0x18] sm:$0xff]  ;;  %v96_v1 = vld [vmem:[#allocation7 + $0x10] sm:$0xff]  ;;  %vm109_vm0 = vcmask 261120   ;;  %s1184_s25 = smov 120  }
  0x14   :  { %128 = vmatpush.msra.mxu0 %v97_v0  ;;  %v95_v2 = vld [vmem:[#allocation7 + $0x8] sm:$0xff]  ;;  %v94_v3 = vld [vmem:[#allocation7] sm:$0xff]  ;;  %s1185_s26 = smov 96   ;;  %s1186_s27 = smov 88   ;;  %v1277_v8 = vld [vmem:[#allocation2 + $0x8] sm:$0xff]  ;;  %vm142_vm1 = vcmask 64512  }
  0x15   :  { %v1263_v4 = vld [vmem:[#allocation2] sm:$0xff]  ;;  %v1286_v12 = vld [vmem:[#allocation5] sm:$0x3]  ;;  %s1188_s28 = smov 72   ;;  %s1189_s29 = smov 64   ;;  %v98_v46 = vld [vmem:[#allocation8] sm:$0xff] }
  0x16   :  { %129 = vmatpush.msra.mxu0 %v96_v1  ;;  %v1008_v5 = vld [vmem:[%s1435_s3] ss:$0 sm:$0xff]  ;;  %v1289_v13 = vperm.slane %v1286_v12, 0  ;;  %s1187_s3 = smov 112   ;;  %s1190_s30 = smov 56   ;;  %v100_v1 = vld [vmem:[#allocation8 + $0x10] sm:$0xff] }
  0x17   :  { %s1191_s9 = smov 80   ;;  %v99_v47 = vld [vmem:[#allocation8 + $0x8] sm:$0xff]  ;;  %s1192_s10 = smov 48  }
  0x18   :  { %130 = vmatpush.msra.mxu0 %v95_v2  ;;  %s1193_s11 = smov 104   ;;  %s1194_s12 = smov 40  }
  0x19   :  { %s940_s0 = sshll.u32 %s1440_s8, 4  ;;  %s941_s0 = int_to_ptr.hbm [resolvable:$true] %s940_s0 }
  0x1a   :  { %131 = vmatpush.msra.mxu0 %v94_v3 }
  0x1b   :  { %955 = vmatmul.msk.f32.vlgmr.msra.gmra.mxu0 %vm109_vm0, %v1263_v4 }
  0x23   :  { %956 = vmatmul.msk.f32.gmra.mxu0 %vm109_vm0, %v1277_v8 }
  0x98   :  { %v133_v6 = vpop.f32.mrf.mxu0 }
  0x99   :  { %v1270_v7 = vadd.f32 %v1008_v5, %v133_v6 }
  0x9b   :  { %207 = vrot.lane.b32.xlu1 %v1270_v7, %s1184_s25  ;;  %140 = vrot.lane.b32.xlu0 %v1270_v7, %s1185_s26 }
  0xa0   :  { %v136_v22 = vpop.f32.mrf.mxu0 }
  0xa1   :  { %v1297_v23 = vadd.f32 %v1008_v5, %v136_v22 }
  0xa3   :  { %209 = vrot.lane.b32.xlu0 %v1270_v7, %s1186_s27 }
 0x10d   :  { %v141_v9 = vpop.permute.xlu0 %140  ;;  %v208_v11 = vpop.permute.xlu1 %207 }
 0x10e   :  { %957 = vmatpush.xpose.msk.msra.mxu1 %vm142_vm1, %v141_v9 }
 0x111   :  { %958 = vmatmul.msk.f32.vlgmr.msra.gmra.mxu1 %vm142_vm1, %v1270_v7 }
 0x112   :  { %292 = vmatpush.msrb.mxu1 %v99_v47 }
 0x115   :  { %v210_v10 = vpop.permute.xlu0 %209 }
 0x116   :  { %960 = vmatpush.xpose.msk.msra.mxu3 %vm142_vm1, %v210_v10 }
 0x119   :  { %961 = vmatmul.msk.f32.vlgmr.msra.gmra.mxu3 %vm142_vm1, %v208_v11 }
 0x11a   :  { %315 = vmatpush.msrb.mxu3 %v98_v46 }
 0x11c   :  { %405 = vmatpush.msra.mxu3 %v100_v1 }
 0x18e   :  { %v164_v14 = vpop.f32.mrf.mxu1 }
 0x18f   :  { %v167_v15 = vmul.f32 0.35355338, %v164_v14 }
 0x191   :  { %v169_v16 = vadd.f32 %v1289_v13, %v167_v15 }
 0x193   :  { %v170_v17 = vsel %vm142_vm1, %v169_v16, -inf }
 0x194   :  { %171 = vmax.xlane.f32.xlu1 %v170_v17  ;;  %v1346_v17 = vperm.slane %v1286_v12, 1 }
 0x19c   :  { %v232_v18 = vpop.f32.mrf.mxu3 }
 0x19d   :  { %v235_v19 = vmul.f32 0.35355338, %v232_v18 }
 0x19f   :  { %v236_v20 = vadd.f32 %v235_v19, %v1289_v13 }
 0x1a1   :  { %v237_v21 = vsel %vm142_vm1, %v236_v20, -inf }
 0x1a2   :  { %238 = vmax.xlane.f32.xlu2 %v237_v21 }
 0x1ad   :  { %320 = vrot.lane.b32.xlu1 %v1270_v7, %s1187_s3 }
 0x1b5   :  { %546 = vrot.lane.b32.xlu1 %v1297_v23, %s1185_s26 }
 0x1bd   :  { %413 = vrot.lane.b32.xlu1 %v1270_v7, %s1188_s28 }
 0x207   :  { %v172_v24 = vpop.xlane.xlu1 %171 }
 0x208   :  { %v173_v25 = vsub.f32 %v169_v16, %v172_v24 }
 0x20a   :  { %v174_v26 = vmul.f32 1.442695, %v173_v25 }
 0x20c   :  { %1012 = vpow2.f32 %v174_v26 }
 0x212   :  { %v1013_v27 = vpop.eup %1012 }
 0x213   :  { %v176_v28 = vsel %vm142_vm1, %v1013_v27, 0.0 }
 0x214   :  { %177 = vadd.xlane.f32.xlu2 %v176_v28 }
 0x215   :  { %v239_v29 = vpop.xlane.xlu2 %238 }
 0x216   :  { %v240_v30 = vsub.f32 %v236_v20, %v239_v29 }
 0x218   :  { %v241_v31 = vmul.f32 1.442695, %v240_v30 }
 0x21a   :  { %1014 = vpow2.f32 %v241_v31 }
 0x21f   :  { %v321_v32 = vpop.permute.xlu1 %320 }
 0x220   :  { %v1015_v33 = vpop.eup %1014 }
 0x221   :  { %v243_v34 = vsel %vm142_vm1, %v1015_v33, 0.0 }
 0x222   :  { %244 = vadd.xlane.f32.xlu0 %v243_v34 }
 0x227   :  { %v1304_v35 = vpop.permute.xlu1 %546 }
 0x22c   :  { %181 = vrot.lane.b32.xlu2 %v1270_v7, %s1189_s29 }
 0x22f   :  { %v414_v36 = vpop.permute.xlu1 %413 }
 0x230   :  { %969 = vmatpush.xpose.msk.msrb.mxu0 %vm142_vm1, %v414_v36 }
 0x234   :  { %248 = vrot.lane.b32.xlu2 %v1270_v7, %s1190_s30 }
 0x23c   :  { %322 = vrot.lane.b32.xlu2 %v1270_v7, %s1191_s9 }
 0x287   :  { %v178_v37 = vpop.xlane.xlu2 %177 }
 0x288   :  { %1016 = vrcp.f32 %v178_v37 }
 0x28e   :  { %v1017_v38 = vpop.eup %1016 }
 0x28f   :  { %v182_v39 = vpop.permute.xlu2 %181  ;;  %v180_v40 = vmul.f32 %v1017_v38, %v1013_v27 }
 0x290   :  { %202 = vmatpush.msra.mxu2 %v182_v39 }
 0x291   :  { %959 = vmatmul.msk.f32.vlgmr.msra.gmra.mxu2 %vm142_vm1, %v180_v40  ;;  %v1371_v40 = vld [vmem:[#allocation8 + $0x18] sm:$0xff] }
 0x295   :  { %v245_v41 = vpop.xlane.xlu0 %244 }
 0x296   :  { %1018 = vrcp.f32 %v245_v41 }
 0x297   :  { %v249_v42 = vpop.permute.xlu2 %248 }
 0x298   :  { %269 = vmatpush.msrb.mxu2 %v249_v42 }
 0x29c   :  { %v1019_v43 = vpop.eup %1018 }
 0x29d   :  { %v247_v44 = vmul.f32 %v1019_v43, %v1015_v33 }
 0x29f   :  { %962 = vmatmul.msk.f32.vlgmr.msrb.gmra.mxu2 %vm142_vm1, %v247_v44  ;;  %v323_v45 = vpop.permute.xlu2 %322 }
 0x2a0   :  { %965 = vmatpush.xpose.msk.msra.mxu2 %vm142_vm1, %v323_v45 }
 0x2a7   :  { %966 = vmatmul.msk.f32.vlgmr.msra.gmra.mxu2 %vm142_vm1, %v321_v32 }
 0x314   :  { %v204_v48 = vpop.f32.mrf.mxu2 }
 0x315   :  { %964 = vmatmul.msk.f32.vlgmr.msrb.gmra.mxu3 %vm142_vm1, %v204_v48 }
 0x316   :  { %973 = vmatpush.xpose.msk.msrb.mxu3 %vm142_vm1, %v1304_v35 }
 0x322   :  { %v271_v49 = vpop.f32.mrf.mxu2 }
 0x323   :  { %963 = vmatmul.msk.f32.vlgmr.msrb.gmra.mxu1 %vm142_vm1, %v271_v49 }
 0x32a   :  { %v345_v50 = vpop.f32.mrf.mxu2 }
 0x32b   :  { %v348_v51 = vmul.f32 0.35355338, %v345_v50 }
 0x32d   :  { %v349_v52 = vadd.f32 %v348_v51, %v1289_v13 }
 0x32f   :  { %v350_v53 = vsel %vm142_vm1, %v349_v52, -inf }
 0x330   :  { %351 = vmax.xlane.f32.xlu2 %v350_v53 }
 0x348   :  { %586 = vrot.lane.b32.xlu2 %v1297_v23, %s1189_s29 }
 0x398   :  { %v1341_v11 = vpop.f32.mrf.mxu3 }
 0x3a0   :  { %v1332_v2 = vpop.f32.mrf.mxu1 }
 0x3a3   :  { %v352_v54 = vpop.xlane.xlu2 %351 }
 0x3a4   :  { %v353_v55 = vsub.f32 %v349_v52, %v352_v54 }
 0x3a6   :  { %v354_v56 = vmul.f32 1.442695, %v353_v55 }
 0x3a8   :  { %1020 = vpow2.f32 %v354_v56 }
 0x3ab   :  { %v587_v59 = vpop.permute.xlu2 %586 }
 0x3ac   :  { %607 = vmatpush.msra.mxu0 %v587_v59 }
 0x3ae   :  { %v1021_v57 = vpop.eup %1020 }
 0x3af   :  { %v356_v58 = vsel %vm142_vm1, %v1021_v57, 0.0 }
 0x3b0   :  { %357 = vadd.xlane.f32.xlu0 %v356_v58 }
 0x3c4   :  { %361 = vrot.lane.b32.xlu0 %v1270_v7, %s1192_s10 }
 0x3cc   :  { %411 = vrot.lane.b32.xlu0 %v1270_v7, %s1193_s11 }
 0x423   :  { %v358_v60 = vpop.xlane.xlu0 %357 }
 0x424   :  { %1022 = vrcp.f32 %v358_v60 }
 0x42a   :  { %v1023_v61 = vpop.eup %1022 }
 0x42b   :  { %v360_v62 = vmul.f32 %v1023_v61, %v1021_v57 }
 0x436   :  { %v362_v63 = vpop.permute.xlu0 %361 }
 0x437   :  { %382 = vmatpush.msra.mxu1 %v362_v63 }
 0x438   :  { %967 = vmatmul.msk.f32.vlgmr.msra.gmra.mxu1 %vm142_vm1, %v360_v62 }
 0x439   :  { %496 = vmatpush.msrb.mxu1 %v1371_v40 }
 0x43e   :  { %v412_v0 = vpop.permute.xlu0 %411 }
 0x43f   :  { %970 = vmatmul.msk.f32.vlgmr.msrb.gmra.mxu0 %vm142_vm1, %v412_v0 }
 0x440   :  { %720 = vmatpush.msrb.mxu0 %v98_v46 }
 0x4b5   :  { %v384_v3 = vpop.f32.mrf.mxu1 }
 0x4b6   :  { %968 = vmatmul.msk.f32.vlgmr.msra.gmra.mxu3 %vm142_vm1, %v384_v3 }
 0x4b7   :  { %697 = vmatpush.msra.mxu3 %v99_v47 }
 0x4bc   :  { %v436_v5 = vpop.f32.mrf.mxu0 }
 0x4bd   :  { %v439_v6 = vmul.f32 0.35355338, %v436_v5  ;;  %v318_v5 = vadd.f32 %v1341_v11, %v1332_v2 }
 0x4be   :  { %974 = vmatmul.msk.f32.vlgmr.msrb.gmra.mxu3 %vm142_vm1, %v1297_v23 }
 0x4bf   :  { %v440_v9 = vadd.f32 %v439_v6, %v1289_v13  ;;  %810 = vmatpush.msrb.mxu3 %v100_v1 }
 0x4c1   :  { %v441_v10 = vsel %vm142_vm1, %v440_v9, -inf }
 0x4c2   :  { %442 = vmax.xlane.f32.xlu2 %v441_v10 }
 0x4da   :  { %727 = vrot.lane.b32.xlu2 %v1297_v23, %s1191_s9 }
 0x535   :  { %v443_v15 = vpop.xlane.xlu2 %442 }
 0x536   :  { %v444_v16 = vsub.f32 %v440_v9, %v443_v15  ;;  %v1397_v15 = vld [vmem:[%s1437_s5] ss:$0 sm:$0xff] }
 0x538   :  { %v445_v18 = vmul.f32 1.442695, %v444_v16 }
 0x539   :  { %v1343_v14 = vpop.f32.mrf.mxu3 }
 0x53a   :  { %1024 = vpow2.f32 %v445_v18  ;;  %v410_v9 = vadd.f32 %v1343_v14, %v318_v5 }
 0x53d   :  { %v728_v37 = vpop.permute.xlu2 %727 }
 0x540   :  { %v1025_v22 = vpop.eup %1024 }
 0x541   :  { %v569_v19 = vpop.f32.mrf.mxu3  ;;  %v447_v24 = vsel %vm142_vm1, %v1025_v22, 0.0 }
 0x542   :  { %v572_v20 = vmul.f32 0.35355338, %v569_v19 }
 0x544   :  { %v574_v13 = vadd.f32 %v1346_v17, %v572_v20 }
 0x546   :  { %v575_v21 = vsel %vm142_vm1, %v574_v13, -inf }
 0x547   :  { %576 = vmax.xlane.f32.xlu1 %v575_v21 }
 0x54f   :  { %448 = vadd.xlane.f32.xlu1 %v447_v24 }
 0x568   :  { %614 = vrot.lane.b32.xlu1 %v1297_v23, %s1186_s27 }
 0x570   :  { %818 = vrot.lane.b32.xlu1 %v1297_v23, %s1188_s28 }
 0x5ba   :  { %v577_v12 = vpop.xlane.xlu1 %576 }
 0x5bb   :  { %v578_v25 = vsub.f32 %v574_v13, %v577_v12 }
 0x5bd   :  { %v579_v26 = vmul.f32 1.442695, %v578_v25 }
 0x5bf   :  { %1026 = vpow2.f32 %v579_v26 }
 0x5c2   :  { %v449_v29 = vpop.xlane.xlu1 %448 }
 0x5c5   :  { %v1027_v27 = vpop.eup %1026 }
 0x5c6   :  { %v581_v28 = vsel %vm142_vm1, %v1027_v27, 0.0 }
 0x5c7   :  { %582 = vadd.xlane.f32.xlu0 %v581_v28 }
 0x5da   :  { %v615_v30 = vpop.permute.xlu1 %614 }
 0x5db   :  { %452 = vrot.lane.b32.xlu0 %v1270_v7, %s1194_s12 }
 0x5e2   :  { %v819_v34 = vpop.permute.xlu1 %818 }
 0x5e3   :  { %612 = vrot.lane.b32.xlu0 %v1297_v23, %s1184_s25 }
 0x5eb   :  { %725 = vrot.lane.b32.xlu0 %v1297_v23, %s1187_s3 }
 0x5f3   :  { %816 = vrot.lane.b32.xlu0 %v1297_v23, %s1193_s11 }
 0x63a   :  { %v583_v31 = vpop.xlane.xlu0 %582 }
 0x63b   :  { %1028 = vrcp.f32 %v583_v31 }
 0x63c   :  { %1030 = vrcp.f32 %v449_v29 }
 0x641   :  { %v1029_v32 = vpop.eup %1028 }
 0x642   :  { %v585_v33 = vmul.f32 %v1029_v32, %v1027_v27  ;;  %v1031_v7 = vpop.eup %1030  ;;  %v1195_v27 = vmov 32.0  }
 0x643   :  { %v451_v35 = vmul.f32 %v1031_v7, %v1025_v22 }
 0x644   :  { %975 = vmatmul.msk.f32.vlgmr.msra.gmra.mxu0 %vm142_vm1, %v585_v33 }
 0x645   :  { %985 = vmatpush.xpose.msk.msra.mxu0 %vm142_vm1, %v819_v34 }
 0x64d   :  { %v453_v36 = vpop.permute.xlu0 %452 }
 0x64e   :  { %473 = vmatpush.msrb.mxu2 %v453_v36 }
 0x64f   :  { %971 = vmatmul.msk.f32.vlgmr.msrb.gmra.mxu2 %vm142_vm1, %v451_v35 }
 0x650   :  { %976 = vmatpush.xpose.msk.msra.mxu2 %vm142_vm1, %v615_v30 }
 0x654   :  { %981 = vmatpush.xpose.msk.msrb.mxu2 %vm142_vm1, %v728_v37 }
 0x655   :  { %v613_v38 = vpop.permute.xlu0 %612 }
 0x657   :  { %977 = vmatmul.msk.f32.vlgmr.msra.gmra.mxu2 %vm142_vm1, %v613_v38 }
 0x65d   :  { %v726_v39 = vpop.permute.xlu0 %725 }
 0x65f   :  { %982 = vmatmul.msk.f32.vlgmr.msrb.gmra.mxu2 %vm142_vm1, %v726_v39 }
 0x665   :  { %v817_v42 = vpop.permute.xlu0 %816 }
 0x6c1   :  { %v609_v41 = vpop.f32.mrf.mxu0 }
 0x6c2   :  { %980 = vmatmul.msk.f32.vlgmr.msrb.gmra.mxu0 %vm142_vm1, %v609_v41 }
 0x6ca   :  { %986 = vmatmul.msk.f32.vlgmr.msra.gmra.mxu0 %vm142_vm1, %v817_v42 }
 0x6d2   :  { %v475_v43 = vpop.f32.mrf.mxu2 }
 0x6d3   :  { %972 = vmatmul.msk.f32.vlgmr.msrb.gmra.mxu1 %vm142_vm1, %v475_v43 }
 0x6da   :  { %v637_v44 = vpop.f32.mrf.mxu2 }
 0x6db   :  { %v640_v45 = vmul.f32 0.35355338, %v637_v44 }
 0x6dd   :  { %v641_v46 = vadd.f32 %v640_v45, %v1346_v17 }
 0x6df   :  { %v642_v47 = vsel %vm142_vm1, %v641_v46, -inf }
 0x6e0   :  { %643 = vmax.xlane.f32.xlu1 %v642_v47 }
 0x6e2   :  { %v750_v48 = vpop.f32.mrf.mxu2 }
 0x6e3   :  { %v753_v49 = vmul.f32 0.35355338, %v750_v48 }
 0x6e5   :  { %v754_v50 = vadd.f32 %v753_v49, %v1346_v17 }
 0x6e7   :  { %v755_v51 = vsel %vm142_vm1, %v754_v50, -inf }
 0x6e8   :  { %756 = vmax.xlane.f32.xlu0 %v755_v51 }
 0x73f   :  { %v1381_v52 = vpop.f32.mrf.mxu0 }
 0x747   :  { %v841_v53 = vpop.f32.mrf.mxu0 }
 0x748   :  { %v844_v54 = vmul.f32 0.35355338, %v841_v53  ;;  %v1010_v53 = vld [vmem:[%s1438_s6] ss:$0 sm:$0xff]  ;;  %s1196_s6 = smov [#allocation10]  }
 0x74a   :  { %v845_v55 = vadd.f32 %v844_v54, %v1346_v17 }
 0x74c   :  { %v846_v56 = vsel %vm142_vm1, %v845_v55, -inf }
 0x74d   :  { %847 = vmax.xlane.f32.xlu2 %v846_v56  ;;  %v1011_v56 = vld [vmem:[%s1439_s7] ss:$0 sm:$0xff]  ;;  %s938_s7 = sshll.u32 %s1196_s6, 4  ;;  %s939_s7 = int_to_ptr.vmem [resolvable:$true] %s938_s7 }
 0x750   :  { %v498_v6 = vpop.f32.mrf.mxu1 }
 0x751   :  { %v501_v10 = vadd.f32 %v498_v6, %v410_v9 }
 0x753   :  { %v644_v57 = vpop.xlane.xlu1 %643  ;;  %v505_v16 = vadd.f32 %v1397_v15, %v501_v10 }
 0x754   :  { %v645_v58 = vsub.f32 %v641_v46, %v644_v57 }
 0x755   :  { %v506_v17 = vadd.f32 %v505_v16, %v1263_v4 }
 0x756   :  { %v646_v59 = vmul.f32 1.442695, %v645_v58 }
 0x757   :  { %v507_v18 = vsel %vm109_vm0, %v506_v17, 0.0 }
 0x758   :  { %1032 = vpow2.f32 %v646_v59 }
 0x75b   :  { %v757_v60 = vpop.xlane.xlu0 %756 }
 0x75c   :  { %v758_v61 = vsub.f32 %v754_v50, %v757_v60 }
 0x75e   :  { %v1033_v62 = vpop.eup %1032  ;;  %v759_v63 = vmul.f32 1.442695, %v758_v61 }
 0x75f   :  { %v648_v0 = vsel %vm142_vm1, %v1033_v62, 0.0 }
 0x760   :  { %1034 = vpow2.f32 %v759_v63  ;;  %649 = vadd.xlane.f32.xlu1 %v648_v0 }
 0x766   :  { %v1035_v1 = vpop.eup %1034 }
 0x767   :  { %v761_v3 = vsel %vm142_vm1, %v1035_v1, 0.0 }
 0x768   :  { %762 = vadd.xlane.f32.xlu0 %v761_v3 }
 0x779   :  { %653 = vrot.lane.b32.xlu1 %v1297_v23, %s1190_s30 }
 0x77c   :  { %766 = vrot.lane.b32.xlu0 %v1297_v23, %s1192_s10 }
 0x7a3   :  { %508 = vadd.xlane.f32.xlu1 %v507_v18 }
 0x7c0   :  { %v848_v19 = vpop.xlane.xlu2 %847 }
 0x7c1   :  { %v849_v20 = vsub.f32 %v845_v55, %v848_v19 }
 0x7c3   :  { %v850_v13 = vmul.f32 1.442695, %v849_v20 }
 0x7c5   :  { %1036 = vpow2.f32 %v850_v13 }
 0x7cb   :  { %v1037_v2 = vpop.eup %1036 }
 0x7cc   :  { %v852_v11 = vsel %vm142_vm1, %v1037_v2, 0.0 }
 0x7cd   :  { %853 = vadd.xlane.f32.xlu2 %v852_v11 }
 0x7d3   :  { %v650_v14 = vpop.xlane.xlu1 %649 }
 0x7d4   :  { %1038 = vrcp.f32 %v650_v14 }
 0x7da   :  { %v1039_v22 = vpop.eup %1038 }
 0x7db   :  { %v763_v21 = vpop.xlane.xlu0 %762  ;;  %v652_v4 = vmul.f32 %v1039_v22, %v1033_v62 }
 0x7dc   :  { %1040 = vrcp.f32 %v763_v21 }
 0x7dd   :  { %1042 = vrcp.f32 %v1195_v27 }
 0x7e2   :  { %v1041_v25 = vpop.eup %1040 }
 0x7e3   :  { %v765_v26 = vmul.f32 %v1041_v25, %v1035_v1  ;;  %v1043_v28 = vpop.eup %1042 }
 0x7e4   :  { %vm515_vm2 = vweird.f32 %v1043_v28 }
 0x7e5   :  { %857 = vrot.lane.b32.xlu2 %v1297_v23, %s1194_s12  ;;  %v511_v23 = vmul.f32 32.0, %v1043_v28 }
 0x7e7   :  { %v512_v29 = vsub.f32 1.0, %v511_v23 }
 0x7e9   :  { %v513_v30 = vmul.f32 %v1043_v28, %v512_v29 }
 0x7eb   :  { %v654_v24 = vpop.permute.xlu1 %653  ;;  %v514_v31 = vadd.f32 %v1043_v28, %v513_v30 }
 0x7ec   :  { %674 = vmatpush.msra.mxu1 %v654_v24 }
 0x7ed   :  { %978 = vmatmul.msk.f32.vlgmr.msra.gmra.mxu1 %vm142_vm1, %v652_v4  ;;  %v516_v32 = vsel %vm515_vm2, %v1043_v28, %v514_v31 }
 0x7ee   :  { %v767_v12 = vpop.permute.xlu0 %766 }
 0x7ef   :  { %787 = vmatpush.msrb.mxu1 %v767_v12 }
 0x7f1   :  { %901 = vmatpush.msra.mxu1 %v1371_v40 }
 0x7f5   :  { %983 = vmatmul.msk.f32.vlgmr.msrb.gmra.mxu1 %vm142_vm1, %v765_v26 }
 0x816   :  { %v509_v33 = vpop.xlane.xlu1 %508 }
 0x817   :  { %v517_v34 = vmul.f32 %v516_v32, %v509_v33 }
 0x819   :  { %v518_v7 = vsub.f32 %v506_v17, %v517_v34 }
 0x81b   :  { %v519_v35 = vmul.f32 %v518_v7, %v518_v7 }
 0x81d   :  { %v520_v36 = vsel %vm109_vm0, %v519_v35, 0.0 }
 0x81e   :  { %521 = vadd.xlane.f32.xlu2 %v520_v36 }
 0x840   :  { %v854_v37 = vpop.xlane.xlu2 %853 }
 0x841   :  { %1044 = vrcp.f32 %v854_v37 }
 0x847   :  { %v1045_v38 = vpop.eup %1044 }
 0x848   :  { %v856_v39 = vmul.f32 %v1045_v38, %v1037_v2  ;;  %v858_v40 = vpop.permute.xlu2 %857 }
 0x849   :  { %878 = vmatpush.msra.mxu2 %v858_v40 }
 0x84a   :  { %987 = vmatmul.msk.f32.vlgmr.msra.gmra.mxu2 %vm142_vm1, %v856_v39 }
 0x86a   :  { %v676_v41 = vpop.f32.mrf.mxu1 }
 0x86b   :  { %979 = vmatmul.msk.f32.vlgmr.msra.gmra.mxu3 %vm142_vm1, %v676_v41 }
 0x872   :  { %v789_v42 = vpop.f32.mrf.mxu1 }
 0x873   :  { %984 = vmatmul.msk.f32.vlgmr.msrb.gmra.mxu3 %vm142_vm1, %v789_v42 }
 0x891   :  { %v522_v43 = vpop.xlane.xlu2 %521 }
 0x892   :  { %v523_v44 = vmul.f32 %v522_v43, %v516_v32 }
 0x894   :  { %v524_v45 = vadd.f32 1e-12, %v523_v44 }
 0x896   :  { %1046 = vrsqrt.f32 %v524_v45  ;;  %vm531_vm4 = vweird.f32 %v524_v45 }
 0x89c   :  { %v1047_v46 = vpop.eup %1046 }
 0x89d   :  { %v526_v47 = vmul.f32 %v1047_v46, %v524_v45  ;;  %vm532_vm3 = vweird.f32 %v1047_v46 }
 0x89e   :  { %vm533_vm5 = vmor %vm531_vm4, %vm532_vm3 }
 0x89f   :  { %v527_v48 = vmul.f32 %v1047_v46, %v526_v47 }
 0x8a1   :  { %v528_v49 = vmul.f32 0.5, %v527_v48 }
 0x8a3   :  { %v529_v50 = vsub.f32 1.5, %v528_v49 }
 0x8a5   :  { %v530_v51 = vmul.f32 %v1047_v46, %v529_v50 }
 0x8a7   :  { %v534_v54 = vsel %vm533_vm5, %v1047_v46, %v530_v51 }
 0x8a8   :  { %v535_v55 = vmul.f32 %v534_v54, %v518_v7 }
 0x8aa   :  { %v539_v57 = vmul.f32 %v1010_v53, %v535_v55 }
 0x8ac   :  { %v543_v58 = vadd.f32 %v1011_v56, %v539_v57 }
 0x8ae   :  { %544 = vst.msk [vmem:[#allocation10] sm:$0xff] %vm109_vm0, %v543_v58 }
 0x8cd   :  { %v880_v59 = vpop.f32.mrf.mxu2 }
 0x8ce   :  { %988 = vmatmul.msk.f32.vlgmr.msra.gmra.mxu1 %vm142_vm1, %v880_v59 }
 0x8ee   :  { %v699_v60 = vpop.f32.mrf.mxu3 }
 0x8ef   :  { %v723_v62 = vadd.f32 %v1381_v52, %v699_v60 }
 0x8f6   :  { %v812_v61 = vpop.f32.mrf.mxu3 }
 0x8f7   :  { %v815_v63 = vadd.f32 %v812_v61, %v723_v62 }
 0x94b   :  { %v903_v0 = vpop.f32.mrf.mxu1 }
 0x94c   :  { %v906_v1 = vadd.f32 %v903_v0, %v815_v63 }
 0x94e   :  { %v907_v3 = vadd.f32 %v1397_v15, %v906_v1 }
 0x950   :  { %v908_v5 = vadd.f32 %v907_v3, %v1277_v8 }
 0x952   :  { %v909_v6 = vsel %vm109_vm0, %v908_v5, 0.0 }
 0x953   :  { %910 = vadd.xlane.f32.xlu0 %v909_v6 }
 0x9c6   :  { %v911_v9 = vpop.xlane.xlu0 %910 }
 0x9c7   :  { %v912_v10 = vmul.f32 %v911_v9, %v516_v32 }
 0x9c9   :  { %v913_v16 = vsub.f32 %v908_v5, %v912_v10 }
 0x9cb   :  { %v914_v17 = vmul.f32 %v913_v16, %v913_v16 }
 0x9cd   :  { %v915_v18 = vsel %vm109_vm0, %v914_v17, 0.0 }
 0x9ce   :  { %916 = vadd.xlane.f32.xlu1 %v915_v18 }
 0xa41   :  { %v917_v19 = vpop.xlane.xlu1 %916 }
 0xa42   :  { %v918_v20 = vmul.f32 %v917_v19, %v516_v32 }
 0xa44   :  { %v919_v52 = vadd.f32 1e-12, %v918_v20 }
 0xa46   :  { %1048 = vrsqrt.f32 %v919_v52  ;;  %vm926_vm7 = vweird.f32 %v919_v52 }
 0xa4c   :  { %v1049_v13 = vpop.eup %1048 }
 0xa4d   :  { %v921_v2 = vmul.f32 %v1049_v13, %v919_v52  ;;  %vm927_vm6 = vweird.f32 %v1049_v13 }
 0xa4e   :  { %vm928_vm8 = vmor %vm926_vm7, %vm927_vm6 }
 0xa4f   :  { %v922_v11 = vmul.f32 %v1049_v13, %v921_v2 }
 0xa51   :  { %v923_v15 = vmul.f32 0.5, %v922_v11 }
 0xa53   :  { %v924_v14 = vsub.f32 1.5, %v923_v15 }
 0xa55   :  { %v925_v8 = vmul.f32 %v1049_v13, %v924_v14 }
 0xa57   :  { %v929_v21 = vsel %vm928_vm8, %v1049_v13, %v925_v8 }
 0xa58   :  { %v930_v22 = vmul.f32 %v929_v21, %v913_v16 }
 0xa5a   :  { %v931_v4 = vmul.f32 %v1010_v53, %v930_v22 }
 0xa5c   :  { %v932_v24 = vadd.f32 %v1011_v56, %v931_v4 }
 0xa5e   :  { %933 = vst.msk [vmem:[#allocation10 + $0x8] sm:$0xff] %vm109_vm0, %v932_v24 }
 0xa5f   :  { %946 = dma.vmem_to_hbm [thread:$0]  %s939_s7, 256, %s941_s0, [#allocation4], %s1180_s15, %s1180_s15, %s1181_s16  }
 0xa60   :  { %1176 = dma.done.wait [#allocation4], 256  }
 0xa61   :  { %1177 = vsyncadd [#allocation4], 4294967040 }
 0xa62   :  { %951 = vsyncpa [#allocation3], 1 }
 0xa63   :  { %952 = vsyncpa [#allocation6], 1 }
 0xa64   :  { %953 = vsyncpa [#allocation9], 1 }
 0xa65   :  { %954 = vsyncpa [#allocation4], 1 }

</bundles_post_ra>
